<compile_context>
chip_gen: v7x
topology: tpu7x:2x2x1
jax: 0.10.0
libtpu: 0.0.40
codegen_flags: <defaults>
</compile_context>

<pallas_src>
import functools
import math

import jax
import jax.numpy as jnp
import numpy as np
from jax import lax
from jax.experimental import pallas as pl
from jax.experimental.pallas import tpu as pltpu


# ----------------------------------------------------------------------------------
# small helpers
# ----------------------------------------------------------------------------------
def _topk_k(n, rate):
    return max(1, int(math.ceil(n * rate)))


def _topk_mean(m, k, axis):
    """Mean of the top-k values of `m` along `axis` (keepdims=True). k is static."""
    if k == 1:
        return jnp.max(m, axis=axis, keepdims=True)
    n = m.shape[axis]
    iota = lax.broadcasted_iota(jnp.int32, m.shape, axis)   # hoisted: built once
    s = m
    acc = None
    for it in range(k):
        cur = jnp.max(s, axis=axis, keepdims=True)
        acc = cur if acc is None else acc + cur
        if it + 1 < k:                                   # remove exactly one occurrence
            sel = jnp.min(jnp.where(s == cur, iota, n), axis=axis, keepdims=True)
            s = jnp.where(iota == sel, -jnp.inf, s)
    return acc / float(k)


def _im2col_3x3(p, h, w):
    """p: zero-padded [B, h+2, w+2] or [B, h+2, w+2, C]. Returns [B*h*w, 9*C] patches,
    K ordered (dh, dw, cin) to match HWIO weights flattened to [9*C, Cout]."""
    if p.ndim == 3:
        slices = [p[:, dh:dh + h, dw:dw + w][..., None]
                  for dh in range(3) for dw in range(3)]
    else:
        slices = [p[:, dh:dh + h, dw:dw + w, :]
                  for dh in range(3) for dw in range(3)]
    a = jnp.concatenate(slices, axis=-1)                    # [B, h, w, 9*C]
    return a.reshape(p.shape[0] * h * w, a.shape[-1])


def _maxpool2x2_rows(y, b, h, c):
    """y: [b*h*h, c] conv-GEMM output, rows ordered (map, row, col).
    2x2 / stride-2 max-pool -> [b*(h//2)*(h//2), c], rows ordered (map, row, col).
    All intermediates are rank <= 4 and keep the channel (lane) dim intact."""
    hh = h // 2
    y = jnp.max(y.reshape(b * h, hh, 2, c), axis=2)         # pool along columns
    y = jnp.max(y.reshape(b * hh, 2, hh, c), axis=1)        # pool along rows (per map)
    return y.reshape(b * hh * hh, c)


# ----------------------------------------------------------------------------------
# VMEM-aware block sizing
# ----------------------------------------------------------------------------------
def _vmem_caps():
    """(vmem_limit_bytes, per-step block budget) with headroom for compiler scratch."""
    cap = 64 << 20                      # conservative default (v7x has 64 MiB / TC)
    try:
        info = pltpu.get_tpu_info()
        cap_q = int(getattr(info, "vmem_capacity_bytes", cap))
        if cap_q >= (16 << 20):
            cap = cap_q
    except Exception:
        pass
    return int(cap * 0.85), int(cap * 0.5)


def _choose_bb(N, T, R, D, budget_bytes):
    """Largest divisor Bb of N whose f2f per-step working set fits the VMEM budget and
    whose output slab is lane-aligned ((Bb*T) % 128 == 0, or Bb == N = full extent)."""
    def step_bytes(Bb):
        L = Bb * T
        t_blk = 2 * R * L * D * 2          # bf16 target block, double-buffered
        q_blk = 2 * T * R * D * 2          # bf16 query block, double-buffered
        s_tmp = T * R * R * L * 4          # f32 [T*R, R*L] similarity temporary
        m_tmp = 2 * T * R * L * 4          # f32 max / top-k temporaries
        o_blk = 2 * T * L * 4              # f32 output slab, double-buffered
        return t_blk + q_blk + s_tmp + m_tmp + o_blk

    divisors = [d for d in range(N, 0, -1) if N % d == 0]
    valid = [d for d in divisors if d == N or (d * T) % 128 == 0]
    for Bb in valid:
        if step_bytes(Bb) <= budget_bytes:
            return Bb
    return valid[-1]                       # smallest lane-aligned block (may exceed budget)


def _choose_bc(N, T, budget_bytes):
    """Largest divisor Bc of N whose batched-comparator working set fits the budget."""
    h1, h2, h4 = T, T // 2, T // 4
    per_map = (
        (h1 + 2) ** 2                                  # pad1
        + h1 * h1 * (9 + 32)                           # im2col1 + conv1 out
        + h2 * h2 * 32                                 # pooled1
        + (h2 + 2) ** 2 * 32                           # pad2
        + h2 * h2 * (9 * 32 + 64)                      # im2col2 + conv2 out
        + h4 * h4 * 64                                 # pooled2
        + (h4 + 2) ** 2 * 64                           # pad3
        + h4 * h4 * (9 * 64 + 128 + 4)                 # im2col3 + conv3 out + tail
        + 2 * T * T                                    # input block, double-buffered
    ) * 4
    w_bytes = 4 * (9 * 32 + 32 + 288 * 64 + 64 + 576 * 128 + 128 + 128 + 1) * 2
    for Bc in [d for d in range(N, 0, -1) if N % d == 0]:
        if Bc * per_map + w_bytes <= budget_bytes:
            return Bc
    return 1


# ----------------------------------------------------------------------------------
# kernel 1: frame-to-frame TopK-Chamfer similarity
#   one bf16 MXU matmul per (query video, target-video block): [T*R, D] @ [R*Bb*T, D]^T,
#   max over target regions p, top-k mean over query regions o, and ONE lane-dense
#   [T, Bb*T] output store.
# ----------------------------------------------------------------------------------
def _f2f_kernel(q_ref, t_ref, out_ref, *, T, R, D, Bb, k):
    L = Bb * T
    q = q_ref[0]                                       # [T*R, D]      rows = (i, o), bf16
    t = t_ref[...].reshape(R * L, D)                   # [R*Bb*T, D]   rows = (p, b, j), bf16

    s = lax.dot_general(q, t, (((1,), (1,)), ((), ())),
                        preferred_element_type=jnp.float32)   # [T*R, R*L] f32

    m = s[:, 0:L]                                      # max over target regions p
    for p in range(1, R):
        m = jnp.maximum(m, s[:, p * L:(p + 1) * L])    # [T*R, L]

    f = _topk_mean(m.reshape(T, R, L), k, axis=1)      # top-k mean over query regions o
    out_ref[0] = f.reshape(T, L)                       # lane-dense [T, Bb*T] store


# ----------------------------------------------------------------------------------
# kernel 2: VideoComparator (pad1+conv3x3(1->32)+relu+pool, pad1+conv(32->64)+relu+pool,
#           pad1+conv(64->128)+relu, 1x1 conv(128->1)) fused with the similarity-
#           regularization loss, Hardtanh()/2+0.5 and the v2v TopK-Chamfer reduction,
#           batched over Bc similarity maps per grid step. Each conv is im2col + ONE GEMM.
# ----------------------------------------------------------------------------------
def _comparator_kernel(x_ref, w1_ref, b1_ref, w2_ref, b2_ref, w3_ref, b3_ref,
                       w4_ref, b4_ref, sim_ref, loss_ref,
                       pad1_ref, pad2_ref, pad3_ref, *, T, Bc, k_v2v):
    h1 = T
    h2 = T // 2
    h4 = T // 4

    x = x_ref[0]                                                    # [Bc, T, T]

    # ---- conv1: zero-pad 1, 3x3, 1->32, ReLU, 2x2 max-pool (one GEMM for all Bc maps) ----
    pad1_ref[...] = jnp.zeros(pad1_ref.shape, pad1_ref.dtype)
    pad1_ref[:, 1:h1 + 1, 1:h1 + 1] = x
    p1 = _im2col_3x3(pad1_ref[...], h1, h1)                         # [Bc*T*T, 9]
    y1 = jnp.maximum(
        jnp.dot(p1, w1_ref[...], preferred_element_type=jnp.float32) + b1_ref[...], 0.0)
    y1 = _maxpool2x2_rows(y1, Bc, h1, 32)                           # [Bc*h2*h2, 32]

    # ---- conv2: zero-pad 1, 3x3, 32->64, ReLU, 2x2 max-pool ----
    pad2_ref[...] = jnp.zeros(pad2_ref.shape, pad2_ref.dtype)
    pad2_ref[:, 1:h2 + 1, 1:h2 + 1, :] = y1.reshape(Bc, h2, h2, 32)
    p2 = _im2col_3x3(pad2_ref[...], h2, h2)                         # [Bc*h2*h2, 288]
    y2 = jnp.maximum(
        jnp.dot(p2, w2_ref[...], preferred_element_type=jnp.float32) + b2_ref[...], 0.0)
    y2 = _maxpool2x2_rows(y2, Bc, h2, 64)                           # [Bc*h4*h4, 64]

    # ---- conv3: zero-pad 1, 3x3, 64->128, ReLU; then fconv 1x1, 128->1 ----
    pad3_ref[...] = jnp.zeros(pad3_ref.shape, pad3_ref.dtype)
    pad3_ref[:, 1:h4 + 1, 1:h4 + 1, :] = y2.reshape(Bc, h4, h4, 64)
    p3 = _im2col_3x3(pad3_ref[...], h4, h4)                         # [Bc*h4*h4, 576]
    y3 = jnp.maximum(
        jnp.dot(p3, w3_ref[...], preferred_element_type=jnp.float32) + b3_ref[...], 0.0)
    s = lax.dot_general(y3, w4_ref[...], (((1,), (1,)), ((), ())),
                        preferred_element_type=jnp.float32) + b4_ref[...]  # [Bc*h4*h4, 1]
    s3 = s.reshape(Bc, h4, h4)                                      # [map, i (query), j (target)]

    # ---- SimilarityRegularizationLoss on the pre-activation comparator output ----
    pen = jnp.maximum(-1.0 - s3, 0.0) + jnp.maximum(s3 - 1.0, 0.0)  # [Bc, h4, h4]
    loss_vec = jnp.sum(jnp.sum(pen, axis=2), axis=1, keepdims=True)  # [Bc, 1]
    loss_ref[...] = loss_vec.reshape(1, Bc, 1, 1)

    # ---- Hardtanh()/2 + 0.5, then v2v TopK-Chamfer: max over target time (j, lanes),
    #      top-k mean over query time (i) ----
    s_act = jnp.clip(s3, -1.0, 1.0) * 0.5 + 0.5                     # [Bc, h4, h4]
    mrow = jnp.max(s_act, axis=2)                                   # [Bc, h4]
    v2v = _topk_mean(mrow, k_v2v, axis=1)                           # [Bc, 1]
    sim_ref[...] = v2v.reshape(1, Bc, 1, 1)


# ----------------------------------------------------------------------------------
# wrapper = ViSiL.forward(x, masks=None)
# ----------------------------------------------------------------------------------
def visil_forward(x, params, f_topk_rate=0.1, v_topk_rate=0.1,
                  target_block=None, cell_block=None):
    N, T, R, D = x.shape
    assert T % 4 == 0, "comparator assumes T divisible by 4 (two 2x2 max-pools)"

    vmem_limit, vmem_budget = _vmem_caps()

    Bb = _choose_bb(N, T, R, D, vmem_budget) if target_block is None else target_block
    assert N % Bb == 0
    assert Bb == N or (Bb * T) % 128 == 0, "f2f target block must be lane-aligned"

    Bc = _choose_bc(N, T, vmem_budget) if cell_block is None else cell_block
    assert N % Bc == 0

    k_f2f = _topk_k(R, f_topk_rate)
    k_v2v = _topk_k(T // 4, v_topk_rate)
    w1, b1, w2, b2, w3, b3, w4, b4 = params

    # matmul-ready weight layouts (done once, outside the kernels)
    w1r = w1.reshape(9, 32)
    w2r = w2.reshape(9 * 32, 64)
    w3r = w3.reshape(9 * 64, 128)

    # bf16 MXU operands (features are L2-normalized; accumulation stays f32).
    # q rows = (frame i, region o); targets grouped p-major as (p, b, j).
    q_flat = x.reshape(N, T * R, D).astype(jnp.bfloat16)
    t_pre = jnp.transpose(x, (2, 0, 1, 3)).reshape(R, N * T, D).astype(jnp.bfloat16)

    # -------- pass 1: frame-to-frame similarity, lane-dense (N, T, N*T) output --------
    fls_flat = pl.pallas_call(
        functools.partial(_f2f_kernel, T=T, R=R, D=D, Bb=Bb, k=k_f2f),
        out_shape=jax.ShapeDtypeStruct((N, T, N * T), jnp.float32),
        grid_spec=pltpu.PrefetchScalarGridSpec(
            num_scalar_prefetch=0,
            grid=(N, N // Bb),
            in_specs=[
                pl.BlockSpec((1, T * R, D), lambda a, c: (a, 0, 0)),
                pl.BlockSpec((R, Bb * T, D), lambda a, c: (0, c, 0)),
            ],
            out_specs=pl.BlockSpec((1, T, Bb * T), lambda a, c: (a, 0, c)),
        ),
        compiler_params=pltpu.CompilerParams(
            dimension_semantics=("parallel", "parallel"),
            vmem_limit_bytes=vmem_limit),
    )(q_flat, t_pre)

    # [N, T, N*T] -> [N, N, T, T]   (API layout; also feeds the comparator pass)
    frame_level_sim = jnp.transpose(fls_flat.reshape(N, T, N, T), (0, 2, 1, 3))

    # -------- pass 2: comparator + loss + v2v similarity, Bc maps per grid step --------
    sim_cells, loss_cells = pl.pallas_call(
        functools.partial(_comparator_kernel, T=T, Bc=Bc, k_v2v=k_v2v),
        out_shape=(jax.ShapeDtypeStruct((N, N, 1, 1), jnp.float32),
                   jax.ShapeDtypeStruct((N, N, 1, 1), jnp.float32)),
        grid_spec=pltpu.PrefetchScalarGridSpec(
            num_scalar_prefetch=0,
            grid=(N, N // Bc),
            in_specs=[
                pl.BlockSpec((1, Bc, T, T), lambda a, c: (a, c, 0, 0)),
                pl.BlockSpec((9, 32), lambda a, c: (0, 0)),
                pl.BlockSpec((1, 32), lambda a, c: (0, 0)),
                pl.BlockSpec((9 * 32, 64), lambda a, c: (0, 0)),
                pl.BlockSpec((1, 64), lambda a, c: (0, 0)),
                pl.BlockSpec((9 * 64, 128), lambda a, c: (0, 0)),
                pl.BlockSpec((1, 128), lambda a, c: (0, 0)),
                pl.BlockSpec((1, 128), lambda a, c: (0, 0)),
                pl.BlockSpec((1, 1), lambda a, c: (0, 0)),
            ],
            out_specs=(pl.BlockSpec((1, Bc, 1, 1), lambda a, c: (a, c, 0, 0)),
                       pl.BlockSpec((1, Bc, 1, 1), lambda a, c: (a, c, 0, 0))),
            scratch_shapes=[
                pltpu.VMEM((Bc, T + 2, T + 2), jnp.float32),
                pltpu.VMEM((Bc, T // 2 + 2, T // 2 + 2, 32), jnp.float32),
                pltpu.VMEM((Bc, T // 4 + 2, T // 4 + 2, 64), jnp.float32),
            ],
        ),
        compiler_params=pltpu.CompilerParams(
            dimension_semantics=("parallel", "parallel"),
            vmem_limit_bytes=vmem_limit),
    )(frame_level_sim, w1r, b1, w2r, b2, w3r, b3, w4, b4)

    sim_v2v = sim_cells.reshape(N, N)
    loss = jnp.sum(loss_cells)
    return frame_level_sim, sim_v2v, loss


# ----------------------------------------------------------------------------------
# pure-JAX reference (same math, for a correctness check)
# ----------------------------------------------------------------------------------
def reference_forward(x, params, f_topk_rate=0.1, v_topk_rate=0.1):
    N, T, R, D = x.shape
    w1, b1, w2, b2, w3, b3, w4, b4 = params
    hi = lax.Precision.HIGHEST

    sim6 = jnp.einsum('aiok,bjpk->aiopjb', x, x, precision=hi)
    m = jnp.max(sim6, axis=3)                                    # [a,i,o,j,b]
    k_f = _topk_k(R, f_topk_rate)
    top = lax.top_k(jnp.moveaxis(m, 2, -1), k_f)[0]              # [a,i,j,b,k]
    f2f = jnp.mean(top, axis=-1)                                 # [a,i,j,b]
    frame_level_sim = jnp.transpose(f2f, (0, 3, 1, 2))           # [a,b,i,j]

    sim = frame_level_sim.reshape(N * N, T, T, 1)                # NHWC

    def conv(xq, w, bias):
        xp = jnp.pad(xq, ((0, 0), (1, 1), (1, 1), (0, 0)))
        y = lax.conv_general_dilated(xp, w, (1, 1), 'VALID',
                                     dimension_numbers=('NHWC', 'HWIO', 'NHWC'),
                                     precision=hi)
        return y + bias.reshape(1, 1, 1, -1)

    def pool(xq):
        return lax.reduce_window(xq, -jnp.inf, lax.max,
                                 (1, 2, 2, 1), (1, 2, 2, 1), 'VALID')

    y = jax.nn.relu(conv(sim, w1.reshape(3, 3, 1, 32), b1))
    y = pool(y)
    y = jax.nn.relu(conv(y, w2, b2))
    y = pool(y)
    y = jax.nn.relu(conv(y, w3, b3))
    s = jnp.einsum('bhwc,c->bhw', y, w4.reshape(128), precision=hi) + b4.reshape(())

    loss = jnp.sum(jnp.maximum(-1.0 - s, 0.0)) + jnp.sum(jnp.maximum(s - 1.0, 0.0))
    s_act = jnp.clip(s, -1.0, 1.0) * 0.5 + 0.5
    mm = jnp.max(s_act, axis=-1)                                 # [B, H4]
    k_v = _topk_k(s.shape[1], v_topk_rate)
    topv = lax.top_k(mm, k_v)[0]
    v2v = jnp.mean(topv, axis=-1).reshape(N, N)
    return frame_level_sim, v2v, loss


# ----------------------------------------------------------------------------------
if __name__ == "__main__":
    N, T, R, D = 2, 8, 4, 32
    key = jax.random.PRNGKey(0)
    ks = jax.random.split(key, 10)

    def uinit(k, shape, fan_in):
        bound = 1.0 / math.sqrt(fan_in)
        return jax.random.uniform(k, shape, jnp.float32, -bound, bound)

    params = (
        uinit(ks[0], (3, 3, 32), 9),            # conv1 weight  (kh, kw, Cout), Cin=1
        uinit(ks[1], (1, 32), 9),               # conv1 bias
        uinit(ks[2], (3, 3, 32, 64), 9 * 32),   # conv2 weight  (kh, kw, Cin, Cout)
        uinit(ks[3], (1, 64), 9 * 32),          # conv2 bias
        uinit(ks[4], (3, 3, 64, 128), 9 * 64),  # conv3 weight
        uinit(ks[5], (1, 128), 9 * 64),         # conv3 bias
        uinit(ks[6], (1, 128), 128),            # fconv (1x1, 128->1) weight
        uinit(ks[7], (1, 1), 128),              # fconv bias
    )

    x = jax.random.normal(ks[8], (N, T, R, D), jnp.float32)
    x = x / jnp.linalg.norm(x, axis=-1, keepdims=True)   # L2-normalized region features

    frame_level_sim, sim, loss = visil_forward(x, params)
    jax.block_until_ready((frame_level_sim, sim, loss))

    ref_fls, ref_sim, ref_loss = reference_forward(x, params)
    assert np.allclose(np.asarray(frame_level_sim), np.asarray(ref_fls),
                       atol=2e-2, rtol=2e-2)
    assert np.allclose(np.asarray(sim), np.asarray(ref_sim), atol=2e-2, rtol=2e-2)
    assert np.allclose(np.asarray(loss), np.asarray(ref_loss), atol=2e-2, rtol=2e-2)

    print("KERNEL_OK")
</pallas_src>

<mosaic_0001>
module attributes {stable_mosaic.version = 11 : i64} {
  func.func @_f2f_kernel(%arg0: i32, %arg1: i32, %arg2: memref<1x32x32xbf16, #tpu.memory_space<vmem>>, %arg3: memref<4x16x32xbf16, #tpu.memory_space<vmem>>, %arg4: memref<1x8x16xf32, #tpu.memory_space<vmem>>) attributes {dimension_semantics = [#tpu.dimension_semantics<parallel>, #tpu.dimension_semantics<parallel>], iteration_bounds = array<i64: 2, 1>, scalar_prefetch = 0 : i64, scratch_operands = 0 : i64, tpu.core_type = #tpu.core_type<tc>, window_params = [{transform_indices = @transform_0, window_bounds = array<i64: 1, 32, 32>}, {transform_indices = @transform_1, window_bounds = array<i64: 4, 16, 32>}, {transform_indices = @transform_2, window_bounds = array<i64: 1, 8, 16>}]} {
    %c0 = arith.constant 0 : index
    %c0_0 = arith.constant 0 : index
    %c0_1 = arith.constant 0 : index
    %0 = vector.load %arg2[%c0, %c0_0, %c0_1] : memref<1x32x32xbf16, #tpu.memory_space<vmem>>, vector<1x32x32xbf16>
    %1 = vector.shape_cast %0 : vector<1x32x32xbf16> to vector<32x32xbf16>
    %c0_2 = arith.constant 0 : index
    %c0_3 = arith.constant 0 : index
    %c0_4 = arith.constant 0 : index
    %2 = vector.load %arg3[%c0_2, %c0_3, %c0_4] : memref<4x16x32xbf16, #tpu.memory_space<vmem>>, vector<4x16x32xbf16>
    %3 = vector.shape_cast %2 : vector<4x16x32xbf16> to vector<64x32xbf16>
    %cst = arith.constant dense<0.000000e+00> : vector<32x64xf32>
    %4 = tpu.matmul %1, %3, %cst {dimension_numbers = #tpu.dot_dimension_numbers<[1], [1], [0], [0], [0, 0, 1, 0], [], []>} : vector<32x32xbf16>, vector<64x32xbf16>, vector<32x64xf32> -> vector<32x64xf32>
    %5 = vector.extract_strided_slice %4 {offsets = [0, 0], sizes = [32, 16], strides = [1, 1]} : vector<32x64xf32> to vector<32x16xf32>
    %6 = vector.extract_strided_slice %4 {offsets = [0, 16], sizes = [32, 16], strides = [1, 1]} : vector<32x64xf32> to vector<32x16xf32>
    %7 = arith.maximumf %5, %6 : vector<32x16xf32>
    %8 = vector.extract_strided_slice %4 {offsets = [0, 32], sizes = [32, 16], strides = [1, 1]} : vector<32x64xf32> to vector<32x16xf32>
    %9 = arith.maximumf %7, %8 : vector<32x16xf32>
    %10 = vector.extract_strided_slice %4 {offsets = [0, 48], sizes = [32, 16], strides = [1, 1]} : vector<32x64xf32> to vector<32x16xf32>
    %11 = arith.maximumf %9, %10 : vector<32x16xf32>
    %12 = vector.shape_cast %11 : vector<32x16xf32> to vector<8x4x16xf32>
    %cst_5 = arith.constant dense<0xFF800000> : vector<8x16xf32>
    %13 = vector.multi_reduction <maximumf>, %12, %cst_5 [1] : vector<8x4x16xf32> to vector<8x16xf32>
    %14 = vector.shape_cast %13 : vector<8x16xf32> to vector<8x1x16xf32>
    %15 = vector.shape_cast %14 : vector<8x1x16xf32> to vector<8x16xf32>
    %c0_6 = arith.constant 0 : index
    %c0_7 = arith.constant 0 : index
    %c0_8 = arith.constant 0 : index
    %16 = vector.load %arg4[%c0_6, %c0_7, %c0_8] : memref<1x8x16xf32, #tpu.memory_space<vmem>>, vector<1x8x16xf32>
    %17 = vector.shape_cast %16 : vector<1x8x16xf32> to vector<8x16xf32>
    %18 = vector.shape_cast %15 : vector<8x16xf32> to vector<1x8x16xf32>
    tpu.vector_store %arg4[%c0_6, %c0_7, %c0_8], %18 {strides = array<i32>} : memref<1x8x16xf32, #tpu.memory_space<vmem>>, vector<1x8x16xf32>,
    return
  }
  func.func @transform_0(%arg0: i32, %arg1: i32) -> (i32, i32, i32) {
    %c0_i32 = arith.constant 0 : i32
    %c0_i32_0 = arith.constant 0 : i32
    %c0_i32_1 = arith.constant 0 : i32
    return %arg0, %c0_i32, %c0_i32_0 : i32, i32, i32
  }
  func.func @transform_1(%arg0: i32, %arg1: i32) -> (i32, i32, i32) {
    %c0_i32 = arith.constant 0 : i32
    %c0_i32_0 = arith.constant 0 : i32
    %c0_i32_1 = arith.constant 0 : i32
    return %c0_i32, %arg1, %c0_i32_0 : i32, i32, i32
  }
  func.func @transform_2(%arg0: i32, %arg1: i32) -> (i32, i32, i32) {
    %c0_i32 = arith.constant 0 : i32
    %c0_i32_0 = arith.constant 0 : i32
    return %arg0, %c0_i32, %arg1 : i32, i32, i32
  }
}

</mosaic_0001>

<bundles_post_ra>
// kernel: tpu_custom_call.1
= control target key start
LH: loop header
LB: loop body
LE: loop exit
PB: predicated region body
PF: predicated region fallthrough
CT: control target
= control target key end

     0   :  { %7 = vsyncpa [#allocation3], 0  ;;  %s1105_s0 = inlined_call_operand.hbm [shape: bf16[2,32,32], index: 0, kind: input, shape index: {}]   ;;  %s1106_s1 = inlined_call_operand.hbm [shape: bf16[4,16,32], index: 1, kind: input, shape index: {}]   ;;  %s1107_s2 = inlined_call_operand.hbm [shape: f32[2,8,16], index: 2, kind: output, shape index: {}]  }
   0x1   :  { %9 = vsyncpa [#allocation3 + $0x1], 0 }
   0x2   :  { %10 = vsyncpa [#allocation6], 0 }
   0x3   :  { %11 = vsyncpa [#allocation4], 0 }
   0x4   :  { %13 = vsyncpa [#allocation4 + $0x1], 0  ;;  %s863_s9 = smov 0   ;;  %s865_s10 = smov 0  }
   0x5   :  { %s867_s11 = smov 0   ;;  %s869_s12 = smov 0  }
   0x6   :  { %s871_s13 = smov 0   ;;  %s873_s14 = smov 0  }
   0x7 LB: > { %s563_s15 = sadd.s32 4294967295, %s838_s14   ;;  %s564_s16 = sadd.s32 4294967294, %s838_s14   ;;  %s838_s14 = sphi %s873_s14, %s19_s14   ;;  %s834_s13 = sphi %s871_s13, %s1131_s13   ;;  %s830_s12 = sphi %s869_s12, %s1130_s12   ;;  %s826_s11 = sphi %s867_s11, %s1129_s11   ;;  %s822_s10 = sphi %s865_s10, %s1128_s10   ;;  %s818_s9 = sphi %s863_s9, %s1127_s9  }
   0x8   : > { %p51_p0 = scmp.ne.s32.totalorder %s822_s10, %s818_s9  ;;  %p897_p1 = scmp.eq.s32.totalorder %s563_s15, 0 }
   0x9   : > { %p901_p2 = scmp.eq.s32.totalorder %s563_s15, 1  ;;  %p109_p3 = scmp.eq.s32.totalorder %s564_s16, 1 }
   0xa   : > { %s1112_s17 = scalar_select %p897_p1, 1, 0 }
   0xb   : > { %s1113_s18 = scalar_select %p901_p2, 1, 0 }
   0xc   : > { %p907_p4 = por %p897_p1, %p51_p0  ;;  %p565_p5 = scmp.ge.s32.totalorder %s838_s14, 1 }
   0xd   : > { %p912_p6 = por %p109_p3, %p51_p0  ;;  %p116_p7 = scmp.lt.s32.totalorder %s838_s14, 3 }
   0xe   : > { %s1114_s19 = scalar_select %p907_p4, 1, 0 }
   0xf   : > { %s1115_s20 = scalar_select %p912_p6, 1, 0 }
  0x10   : > { %p917_p8 = pnand %p565_p5, %p116_p7  ;;  %s840_s22 = smov [#allocation5]  }
  0x11   : > { %s131_s23 = sshll.u32 %s840_s22, 4  ;;  %s31_s25 = sadd.s32 1, %s834_s13  ;;  %s132_s23 = int_to_ptr.vmem [resolvable:$true] %s131_s23 }
  0x12   : > { %s1116_s21 = scalar_select %p917_p8, 1, 0 }
  0x13   : > { %p618_p9 = pneg %p917_p8  ;;  %s694_s28 = scalar_lea.hbm %s1106_s1, 512 }
  0x14   : > { %p695_p12 = scmp.ne.s32.totalorder %s1106_s1, %s694_s28  ;;  %p701_p5 = scmp.lt.u32.totalorder %s694_s28, %s1106_s1 }
  0x15   : > { %p926_p11 = pnand %p618_p9, %p897_p1 }
  0x17   : > { %p696_p13 = pneg %p926_p11 }
  0x19   : > { %p697_p0 = pnand %p696_p13, %p695_p12 }
  0x1b   : > { %p698_p3 = pneg %p697_p0 }
  0x1d   : > { %p703_p7 = pnand %p701_p5, %p698_p3 }
  0x1f   : > { %706 = shalt.err (!%p703_p7)
}
  0x20   : > { %s707_s5 = scalar_lea.vmem %s132_s23, 512  ;;  %p715_p1 = scmp.lt.s32.totalorder %s132_s23, %s132_s23 }
  0x21   : > { %p708_p9 = scmp.ne.s32.totalorder %s132_s23, %s707_s5  ;;  %p716_p4 = scmp.lt.s32.totalorder %s707_s5, %s707_s5 }
  0x23   : > { %p710_p10 = pnand %p708_p9, %p696_p13  ;;  %p717_p8 = por %p716_p4, %p715_p1 }
  0x25   : > { %p711_p6 = pneg %p710_p10 }
  0x27   : > { %p718_p2 = pnand %p717_p8, %p711_p6 }
  0x29   : > { %721 = shalt.err (!%p718_p2)
}
  0x2a   : > { %s841_s6 = smov 64   ;;  %s842_s7 = smov 4  }
  0x2b   : > { %621 = dma.hbm_to_vmem [thread:$0]  (!%p926_p11), %s1106_s1, 512, %s132_s23, [#allocation6], %s841_s6, %s841_s6, %s842_s7  }
  0x2c   : > { %p33_p1 = scmp.ge.s32.totalorder %s31_s25, 2  ;;  %s38_s16 = sadd.s32 1, %s826_s11 }
  0x2d   : > { %p45_p2 = scmp.ne.s32.totalorder %s826_s11, %s822_s10  ;;  %p46_p4 = scmp.eq.s32.totalorder %s838_s14, 0 }
  0x2e   : > { %s1133_s25 = smov (%p33_p1, %s31_s25), 0  ;;  %p1119_p8 = scmp.ne.s32.totalorder %s1113_s18, 0 }
  0x2f   : > { %p956_p6 = por %p46_p4, %p45_p2  ;;  %s35_s26 = ssub.s32 %s834_s13, %s1133_s25 }
  0x30   : > { %p962_p10 = por %p1119_p8, %p45_p2  ;;  %p631_p12 = scmp.lt.s32.totalorder %s838_s14, 2 }
  0x31   : > { %p36_p11 = scmp.eq.s32.totalorder %s35_s26, 0  ;;  %s145_s23 = sand.u32 1, %s826_s11  }
  0x32   : > { %s568_s27 = sshll.u32 %s145_s23, 4  ;;  %s587_s29 = sshll.u32 %s834_s13, 8 }
  0x33   : > { %s971_s28 = scalar_select %p36_p11, %s826_s11, %s38_s16  }
  0x34   : > { %s977_s4 = scalar_lea.hbm %s1105_s0, %s587_s29  ;;  %s149_s18 = scalar_lea.vmem [#allocation2], %s568_s27 }
  0x35   : > { %s156_s5 = sshll.u32 %s149_s18, 4  ;;  %p983_p13 = pnand %p631_p12, %p956_p6  ;;  %s979_s5 = int_to_ptr.vmem [resolvable:$true] %s156_s5 }
  0x36   : > { %s987_s15 = scalar_lea.sflag [#allocation3], %s145_s23  ;;  %s722_s16 = scalar_lea.hbm %s977_s4, 256 }
  0x37   : > { %p723_p0 = scmp.ne.s32.totalorder %s977_s4, %s722_s16  ;;  %p724_p3 = pneg %p983_p13 }
  0x38   : > { %s727_s22 = scalar_lea.hbm %s1105_s0, 512  ;;  %p728_p9 = scmp.lt.u32.totalorder %s977_s4, %s1105_s0 }
  0x39   : > { %p725_p5 = pnand %p724_p3, %p723_p0  ;;  %p729_p1 = scmp.lt.u32.totalorder %s727_s22, %s722_s16 }
  0x3a   : > { %p731_p4 = scmp.lt.u32.totalorder %s722_s16, %s977_s4 }
  0x3b   : > { %p726_p7 = pneg %p725_p5  ;;  %p730_p2 = por %p729_p1, %p728_p9 }
  0x3d   : > { %p732_p6 = por %p731_p4, %p730_p2 }
  0x3f   : > { %p733_p8 = pnand %p732_p6, %p726_p7 }
  0x41   : > { %736 = shalt.err (!%p733_p8)
}
  0x42   : > { %s737_s23 = scalar_lea.vmem %s979_s5, 256  ;;  %s843_s3 = smov [#allocation2]  }
  0x43   : > { %p738_p12 = scmp.ne.s32.totalorder %s979_s5, %s737_s23  ;;  %s742_s18 = sshll.u32 %s843_s3, 4  ;;  %s743_s18 = int_to_ptr.vmem [resolvable:$false] %s742_s18 }
  0x44   : > { %s744_s26 = scalar_lea.vmem %s743_s18, 512  ;;  %p745_p5 = scmp.lt.s32.totalorder %s979_s5, %s743_s18 }
  0x45   : > { %p740_p11 = pnand %p738_p12, %p724_p3  ;;  %p746_p9 = scmp.lt.s32.totalorder %s744_s26, %s737_s23 }
  0x47   : > { %p741_p0 = pneg %p740_p11  ;;  %p747_p1 = por %p746_p9, %p745_p5 }
  0x49   : > { %p748_p2 = pnand %p747_p1, %p741_p0 }
  0x4b   : > { %751 = shalt.err (!%p748_p2)
}
  0x4c   : > { %625 = dma.hbm_to_vmem [thread:$0]  (!%p983_p13), %s977_s4, 256, %s979_s5, %s987_s15, %s841_s6, %s841_s6, %s842_s7  }
  0x4d   : > { %p1122_p3 = scmp.ne.s32.totalorder %s1116_s21, 0 }
  0x4e   : > { %s1021_s16 = sand.u32 (!%p1122_p3), 1, %s822_s10   ;;  %p1123_p7 = scmp.ne.s32.totalorder (!%p1122_p3), %s1114_s19, 0 }
  0x4f   : > { %168 = sbr.rel (%p1122_p3) target bundleno = 506 (0x1fa), region = 28  ;;  %s572_s27 = sshll.u32 (!%p1122_p3), %s1021_s16, 4 }
  0x50   : > { %s171_s22 = scalar_lea.sflag (!%p1122_p3), [#allocation3], %s1021_s16  ;;  %s174_s29 = scalar_lea.vmem (!%p1122_p3), [#allocation2], %s572_s27 }
  0x56   : > { %805 = dma.done.wait (%p1123_p7), %s171_s22, 256  }
  0x57   : > { %807 = vsyncadd (%p1123_p7), %s171_s22, 4294967040  ;;  %p1124_p4 = scmp.ne.s32.totalorder %s1112_s17, 0 }
  0x59   : > { %809 = dma.done.wait (%p1124_p4), [#allocation6], 512  }
  0x5a   : > { %811 = vsyncadd (%p1124_p4), [#allocation6], 4294966784  ;;  %vm243_vm0 = vcmask 261120   ;;  %v688_v0 = vld [vmem:[#allocation5] sm:$0xff]   ;;  %v689_v1 = vld [vmem:[#allocation5 + $0x8] sm:$0xff]   ;;  %s844_s17 = smov 112  }
  0x5b   : > { %606 = vmatprep.subr.msk.bf16.mxu0 %vm243_vm0, %v688_v0  ;;  %v251_v2 = vsel %vm243_vm0, %v688_v0, 0  ;;  %v692_v3 = vld [vmem:[%s174_s29] sm:$0xff]   ;;  %v254_v4 = vsel %vm243_vm0, %v689_v1, 0  ;;  %v691_v7 = vld [vmem:[#allocation5 + $0x18] sm:$0xff]   ;;  %s845_s19 = smov 96   ;;  %s846_s21 = smov 80  }
  0x5c   : > { %595 = vmatpush3.bf16.xpose.msra.mxu0 %v251_v2  ;;  %602 = vmatprep.mubr.msk.bf16.mxu0 %vm243_vm0, %v692_v3  ;;  %v690_v5 = vld [vmem:[#allocation5 + $0x10] sm:$0xff]   ;;  %v260_v8 = vsel %vm243_vm0, %v691_v7, 0  ;;  %v693_v9 = vld [vmem:[%s174_s29 + $0x8] sm:$0xff]   ;;  %vm375_vm1 = vcmask 125952   ;;  %vm440_vm2 = vcmask 1041409   ;;  %vm442_vm3 = vcmask 1042434  }
  0x5d   : > { %607 = vmatprep.subr.msk.bf16.mxu0 %vm243_vm0, %v689_v1  ;;  %v257_v6 = vsel %vm243_vm0, %v690_v5, 0  ;;  %vm444_vm4 = vcmask 1043459   ;;  %s574_s6 = sshll.u32 %s1021_s16, 3  ;;  %vm446_vm5 = vcmask 1044484   ;;  %vm448_vm6 = vcmask 1045509   ;;  %s584_s7 = sshll.u32 %s830_s12, 7 }
  0x5e   : > { %vm450_vm7 = vcmask 1046534   ;;  %s198_s4 = scalar_lea.vmem [#allocation7], %s574_s6  ;;  %vm452_vm8 = vcmask 1047559   ;;  %vm455_vm9 = vcmask 130048   ;;  %s1056_s30 = scalar_lea.hbm %s1107_s2, %s584_s7 }
  0x5f   : > { %s472_s5 = sshll.u32 %s198_s4, 4  ;;  %s458_s12 = scalar_lea.sflag [#allocation4], %s1021_s16  ;;  %s1058_s5 = int_to_ptr.vmem [resolvable:$true] %s472_s5 }
  0x60   : > { %s752_s23 = scalar_lea.vmem %s1058_s5, 128  ;;  %s847_s3 = smov [#allocation7]  }
  0x61   : > { %p753_p13 = scmp.ne.s32.totalorder %s1058_s5, %s752_s23  ;;  %s756_s18 = sshll.u32 %s847_s3, 4  ;;  %s757_s18 = int_to_ptr.vmem [resolvable:$false] %s756_s18 }
  0x62   : > { %s758_s26 = scalar_lea.vmem %s757_s18, 256  ;;  %p759_p12 = scmp.lt.s32.totalorder %s1058_s5, %s757_s18 }
  0x63   : > { %p754_p6 = pnand %p753_p13, %p962_p10  ;;  %p760_p11 = scmp.lt.s32.totalorder %s758_s26, %s752_s23 }
  0x64   : > { %597 = vmatpush3.bf16.xpose.msra.mxu0 %v254_v4 }
  0x65   : > { %608 = vmatprep.subr.msk.bf16.mxu0 %vm243_vm0, %v690_v5  ;;  %p755_p8 = pneg %p754_p6  ;;  %p761_p0 = por %p760_p11, %p759_p12 }
  0x67   : > { %p762_p5 = pnand %p761_p0, %p755_p8 }
  0x6c   : > { %599 = vmatpush3.bf16.xpose.msra.mxu0 %v257_v6 }
  0x6d   : > { %609 = vmatprep.subr.msk.bf16.mxu0 %vm243_vm0, %v691_v7 }
  0x74   : > { %601 = vmatpush3.bf16.xpose.msra.mxu0 %v260_v8 }
  0x7b   : > { %603 = vmatmul.mubr.msk.bf16.vlgmr.msra.gmra.mrb[0].mxu0 %vm243_vm0, %v693_v9 }
 0x14e   : > { %v604_v10 = vpop.f32.mrb[0].mxu0 }
 0x14f   : > { %319 = vrot.lane.b32.xlu1 %v604_v10, %s844_s17  ;;  %v296_v11 = vpop.f32.mrb[1].mxu0 }
 0x150   : > { %315 = vrot.lane.b32.xlu0 %v296_v11, %s844_s17  ;;  %v605_v12 = vpop.f32.mrb[2].mxu0 }
 0x151   : > { %v299_v13 = vpop.f32.mrb[3].mxu0 }
 0x153   : > { %335 = vrot.lane.b32.xlu1 %v604_v10, %s845_s19 }
 0x154   : > { %321 = vrot.lane.b32.xlu0 %v605_v12, %s844_s17 }
 0x157   : > { %331 = vrot.lane.b32.xlu1 %v296_v11, %s845_s19 }
 0x158   : > { %317 = vrot.lane.b32.xlu0 %v299_v13, %s844_s17 }
 0x15b   : > { %347 = vrot.lane.b32.xlu1 %v296_v11, %s846_s21 }
 0x15c   : > { %333 = vrot.lane.b32.xlu0 %v299_v13, %s845_s19 }
 0x15f   : > { %337 = vrot.lane.b32.xlu1 %v605_v12, %s845_s19 }
 0x160   : > { %349 = vrot.lane.b32.xlu0 %v299_v13, %s846_s21 }
 0x163   : > { %353 = vrot.lane.b32.xlu1 %v605_v12, %s846_s21 }
 0x164   : > { %351 = vrot.lane.b32.xlu0 %v604_v10, %s846_s21 }
 0x1c1   : > { %v320_v14 = vpop.permute.xlu1 %319 }
 0x1c2   : > { %v316_v15 = vpop.permute.xlu0 %315  ;;  %v329_v31 = vmax.f32 %v604_v10, %v320_v14 }
 0x1c3   : > { %v327_v19 = vmax.f32 %v296_v11, %v316_v15 }
 0x1c5   : > { %v336_v16 = vpop.permute.xlu1 %335 }
 0x1c6   : > { %v322_v17 = vpop.permute.xlu0 %321  ;;  %v345_v38 = vmax.f32 %v329_v31, %v336_v16 }
 0x1c7   : > { %v330_v32 = vmax.f32 %v605_v12, %v322_v17 }
 0x1c9   : > { %v332_v18 = vpop.permute.xlu1 %331 }
 0x1ca   : > { %v318_v20 = vpop.permute.xlu0 %317  ;;  %v343_v21 = vmax.f32 %v327_v19, %v332_v18 }
 0x1cb   : > { %v328_v25 = vmax.f32 %v299_v13, %v318_v20 }
 0x1cd   : > { %v348_v22 = vpop.permute.xlu1 %347 }
 0x1ce   : > { %v359_v23 = vmax.f32 %v343_v21, %v348_v22  ;;  %v334_v24 = vpop.permute.xlu0 %333 }
 0x1cf   : > { %v344_v29 = vmax.f32 %v328_v25, %v334_v24 }
 0x1d0   : > { %v367_v26 = vcombine.high %v359_v23, %v359_v23  ;;  %v376_v27 = vsel %vm375_vm1, %v359_v23, -inf }
 0x1d1   : > { %v377_v28 = vrot.slane %v376_v27, 4  ;;  %v338_v30 = vpop.permute.xlu1 %337 }
 0x1d2   : > { %v383_v33 = vsel %vm375_vm1, %v367_v26, -inf  ;;  %v350_v34 = vpop.permute.xlu0 %349  ;;  %v346_v39 = vmax.f32 %v330_v32, %v338_v30 }
 0x1d3   : > { %v378_v35 = vmax.f32 %v376_v27, %v377_v28  ;;  %v384_v36 = vrot.slane %v383_v33, 4  ;;  %v360_v37 = vmax.f32 %v344_v29, %v350_v34 }
 0x1d5   : > { %v379_v40 = vrot.slane %v378_v35, 2  ;;  %v385_v41 = vmax.f32 %v383_v33, %v384_v36  ;;  %v368_v42 = vcombine.high %v360_v37, %v360_v37  ;;  %v390_v43 = vsel %vm375_vm1, %v360_v37, -inf  ;;  %v354_v44 = vpop.permute.xlu1 %353 }
 0x1d6   : > { %v391_v45 = vrot.slane %v390_v43, 4  ;;  %v362_v46 = vmax.f32 %v346_v39, %v354_v44  ;;  %v352_v47 = vpop.permute.xlu0 %351 }
 0x1d7   : > { %v380_v48 = vmax.f32 %v378_v35, %v379_v40  ;;  %v386_v49 = vrot.slane %v385_v41, 2  ;;  %v397_v50 = vsel %vm375_vm1, %v368_v42, -inf  ;;  %v361_v51 = vmax.f32 %v345_v38, %v352_v47 }
 0x1d8   : > { %v392_v52 = vmax.f32 %v390_v43, %v391_v45  ;;  %v398_v53 = vrot.slane %v397_v50, 4  ;;  %v370_v54 = vcombine.high %v362_v46, %v362_v46  ;;  %v418_v55 = vsel %vm375_vm1, %v362_v46, -inf }
 0x1d9   : > { %v387_v56 = vmax.f32 %v385_v41, %v386_v49  ;;  %v419_v57 = vrot.slane %v418_v55, 4  ;;  %v369_v58 = vcombine.high %v361_v51, %v361_v51  ;;  %v404_v62 = vsel %vm375_vm1, %v361_v51, -inf }
 0x1da   : > { %v393_v59 = vrot.slane %v392_v52, 2  ;;  %v399_v60 = vmax.f32 %v397_v50, %v398_v53  ;;  %v425_v61 = vsel %vm375_vm1, %v370_v54, -inf  ;;  %v381_v63 = vrot.slane %v380_v48, 1 }
 0x1db   : > { %v388_v0 = vrot.slane %v387_v56, 1  ;;  %v420_v1 = vmax.f32 %v418_v55, %v419_v57  ;;  %v426_v2 = vrot.slane %v425_v61, 4  ;;  %v405_v5 = vrot.slane %v404_v62, 4 }
 0x1dc   : > { %v394_v3 = vmax.f32 %v392_v52, %v393_v59  ;;  %v400_v4 = vrot.slane %v399_v60, 2  ;;  %v411_v6 = vsel %vm375_vm1, %v369_v58, -inf  ;;  %v382_v14 = vmax.f32 %v380_v48, %v381_v63 }
 0x1dd   : > { %v389_v7 = vmax.f32 %v387_v56, %v388_v0  ;;  %v421_v8 = vrot.slane %v420_v1, 2  ;;  %v427_v9 = vmax.f32 %v425_v61, %v426_v2  ;;  %v412_v10 = vrot.slane %v411_v6, 4 }
 0x1de   : > { %v395_v11 = vrot.slane %v394_v3, 1  ;;  %v401_v12 = vmax.f32 %v399_v60, %v400_v4  ;;  %v406_v13 = vmax.f32 %v404_v62, %v405_v5 }
 0x1df   : > { %v428_v15 = vrot.slane %v427_v9, 2  ;;  %v413_v16 = vmax.f32 %v411_v6, %v412_v10  ;;  %v422_v19 = vmax.f32 %v420_v1, %v421_v8  ;;  %v441_v21 = vsel %vm440_vm2, %v389_v7, %v382_v14 }
 0x1e0   : > { %v396_v17 = vmax.f32 %v394_v3, %v395_v11  ;;  %v402_v18 = vrot.slane %v401_v12, 1  ;;  %v407_v20 = vrot.slane %v406_v13, 2 }
 0x1e1   : > { %v429_v22 = vmax.f32 %v427_v9, %v428_v15  ;;  %v414_v23 = vrot.slane %v413_v16, 2  ;;  %v423_v29 = vrot.slane %v422_v19, 1 }
 0x1e2   : > { %v403_v24 = vmax.f32 %v401_v12, %v402_v18  ;;  %v443_v25 = vsel %vm442_vm3, %v396_v17, %v441_v21  ;;  %v408_v26 = vmax.f32 %v406_v13, %v407_v20 }
 0x1e3   : > { %v415_v27 = vmax.f32 %v413_v16, %v414_v23  ;;  %v430_v31 = vrot.slane %v429_v22, 1  ;;  %v424_v35 = vmax.f32 %v422_v19, %v423_v29 }
 0x1e4   : > { %v445_v28 = vsel %vm444_vm4, %v403_v24, %v443_v25  ;;  %v409_v30 = vrot.slane %v408_v26, 1 }
 0x1e5   : > { %v416_v32 = vrot.slane %v415_v27, 1  ;;  %v431_v37 = vmax.f32 %v429_v22, %v430_v31 }
 0x1e6   : > { %v410_v33 = vmax.f32 %v408_v26, %v409_v30 }
 0x1e7   : > { %v417_v34 = vmax.f32 %v415_v27, %v416_v32 }
 0x1e8   : > { %v447_v36 = vsel %vm446_vm5, %v410_v33, %v445_v28 }
 0x1e9   : > { %v449_v38 = vsel %vm448_vm6, %v417_v34, %v447_v36 }
 0x1ea   : > { %v451_v39 = vsel %vm450_vm7, %v424_v35, %v449_v38 }
 0x1eb   : > { %v453_v40 = vsel %vm452_vm8, %v431_v37, %v451_v39 }
 0x1ec   : > { %456 = vst.msk [vmem:[%s198_s4] sm:$0xff] %vm455_vm9, %v453_v40 }
 0x1ed   : > { %765 = shalt.err (!%p762_p5)
}
 0x1ee   : > { %s766_s16 = scalar_lea.hbm %s1056_s30, 128  ;;  %s770_s29 = scalar_lea.hbm %s1107_s2, 256 }
 0x1ef   : > { %p767_p9 = scmp.ne.s32.totalorder %s1056_s30, %s766_s16  ;;  %p771_p3 = scmp.lt.u32.totalorder %s1056_s30, %s1107_s2 }
 0x1f0   : > { %p772_p7 = scmp.lt.u32.totalorder %s770_s29, %s766_s16  ;;  %p774_p13 = scmp.lt.u32.totalorder %s766_s16, %s1056_s30 }
 0x1f1   : > { %p768_p1 = pnand %p767_p9, %p962_p10 }
 0x1f2   : > { %p773_p4 = por %p772_p7, %p771_p3 }
 0x1f3   : > { %p769_p2 = pneg %p768_p1 }
 0x1f4   : > { %p775_p6 = por %p774_p13, %p773_p4 }
 0x1f6   : > { %p776_p8 = pnand %p775_p6, %p769_p2 }
 0x1f8   : > { %779 = shalt.err (!%p776_p8)
}
 0x1f9   : > { %616 = dma.vmem_to_hbm [thread:$0]  (%p962_p10), %s1058_s5, 128, %s1056_s30, %s458_s12  }
 0x1fa PF: > { %s484_s21 = sand.u32 1, %s818_s9   ;;  %p1125_p12 = scmp.ne.s32.totalorder %s1115_s20, 0 }
 0x1fb   : > { %p1126_p11 = scmp.ge.s32.totalorder %s838_s14, 2  ;;  %s485_s6 = scalar_lea.sflag [#allocation4], %s484_s21 }
 0x1fd   : > { %p627_p0 = pnand %p1126_p11, %p1125_p12 }
 0x1ff   : > { %813 = dma.done.wait (!%p627_p0), %s485_s6, 128  }
 0x200   : > { %815 = vsyncadd (!%p627_p0), %s485_s6, 4294967168  ;;  %s19_s14 = sadd.s32 1, %s838_s14   ;;  %s1127_s9 = smov %s822_s10 }
 0x201   : > { %p16_p5 = scmp.ge.s32.totalorder %s19_s14, 4   ;;  %s1128_s10 = smov %s826_s11 }
 0x202   : > { %s1129_s11 = smov %s971_s28  ;;  %s1130_s12 = smov %s834_s13 }
 0x203   : > { %s1131_s13 = smov %s1133_s25  ;;  %18 = sbr.rel (!%p16_p5) target bundleno = 7 (0x7), region = 78 }
 0x20a   :  { %490 = vsyncpa [#allocation3], 1 }
 0x20b   :  { %492 = vsyncpa [#allocation3 + $0x1], 1 }
 0x20c   :  { %493 = vsyncpa [#allocation6], 1 }
 0x20d   :  { %494 = vsyncpa [#allocation4], 1 }
 0x20e   :  { %496 = vsyncpa [#allocation4 + $0x1], 1 }

</bundles_post_ra>
